<compile_context>
chip_gen: v7x
topology: tpu7x:2x2x1
jax: 0.10.0
libtpu: 0.0.40
codegen_flags: <defaults>
</compile_context>

<pallas_src>
import math

import jax
import jax.numpy as jnp
from jax.experimental import pallas as pl
from jax.experimental.pallas import tpu as pltpu


def _round_up(x, m):
    return (x + m - 1) // m * m


def _pick_tile(n, want):
    """Largest multiple of 128 that divides n and is <= want (floor 128)."""
    t = max(128, min(want, n))
    t = (t // 128) * 128
    while t > 128 and n % t != 0:
        t -= 128
    return t


# ---------------------------------------------------------------------------
# Kernel 1: one wide lane-dense matmul producing proj | skip | attention scores.
# ---------------------------------------------------------------------------
def gat_proj_kernel(x_ref, w_ref, proj_ref, skip_ref, sc_ref):
    hf = proj_ref.shape[-1]
    prod = jnp.dot(x_ref[...], w_ref[...],
                   preferred_element_type=jnp.float32)     # (bm1, 2*HF + SC) f32
    proj_ref[...] = prod[:, :hf].astype(proj_ref.dtype)     # lane-dense bf16
    skip_ref[...] = prod[:, hf:2 * hf].astype(skip_ref.dtype)
    sc_ref[...] = prod[:, 2 * hf:]                           # scores (f32, padded)


# ---------------------------------------------------------------------------
# Kernel 2: dense-masked neighborhood softmax + aggregation (flash-style online
#           softmax), fused skip + bias + ELU epilogue. One head at a time.
# ---------------------------------------------------------------------------
def gat_attn_kernel(strg_ref, ssrc_ref, mask_ref, proj_ref, skip_ref, bias_ref,
                    o_ref, m_scr, l_scr, acc_scr):
    k = pl.program_id(1)
    num_heads = strg_ref.shape[-1]
    hf = acc_scr.shape[-1]
    f = hf // num_heads

    @pl.when(k == 0)
    def _init():
        m_scr[...] = jnp.full_like(m_scr, -1e30)
        l_scr[...] = jnp.zeros_like(l_scr)
        acc_scr[...] = jnp.zeros_like(acc_scr)

    mask = mask_ref[...].astype(jnp.float32)        # (bm, bk): edge multiplicity j->i

    # Static unroll over heads: only one (bm, bk) score/exp tile live at a time.
    for h in range(num_heads):
        lo, hi = h * f, (h + 1) * f
        # e[i, j] = LeakyReLU_0.2(s_trg[i, h] + s_src[j, h])
        s = strg_ref[:, h:h + 1] + ssrc_ref[h:h + 1, :]          # (bm,1)+(1,bk)->(bm,bk)
        s = jnp.where(s >= 0.0, s, 0.2 * s)
        m_prev = m_scr[:, h:h + 1]                                # (bm, 1)
        m_new = jnp.maximum(m_prev, jnp.max(s, axis=-1, keepdims=True))
        alpha = jnp.exp(m_prev - m_new)                           # (bm, 1)
        p = mask * jnp.exp(s - m_new)                             # masked exp scores
        # l is stored broadcast across this head's F lanes -> finalize is a plain
        # lane-dense divide (no reshape / concat).
        l_scr[:, lo:hi] = alpha * l_scr[:, lo:hi] + jnp.sum(p, axis=-1, keepdims=True)
        acc_scr[:, lo:hi] = alpha * acc_scr[:, lo:hi] + jnp.dot(
            p.astype(proj_ref.dtype), proj_ref[:, lo:hi],
            preferred_element_type=jnp.float32)
        m_scr[:, h:h + 1] = m_new

    @pl.when(k == pl.num_programs(1) - 1)
    def _finalize():
        out = acc_scr[...] / (l_scr[...] + 1e-16)                 # (bm, HF), lane-dense
        out = out + skip_ref[...].astype(jnp.float32) + bias_ref[...]
        # ELU epilogue (VPU/EUP) rides under the reduction loop.
        o_ref[...] = jnp.where(out > 0.0, out,
                               jnp.exp(jnp.minimum(out, 0.0)) - 1.0).astype(o_ref.dtype)


# ---------------------------------------------------------------------------
# Wrapper
# ---------------------------------------------------------------------------
def gat_layer_forward(x, edge_index, params, *, num_heads, num_out_features,
                      block_m=512, block_k=512):
    """Pallas GAT layer forward (concat=True, add_skip_connection=True, bias, ELU).
    Dropout (p=0.6 in the module) is identity (eval mode)."""
    N, f_in = x.shape
    H, F = num_heads, num_out_features
    HF = H * F
    assert HF % 128 == 0, "heads*out_features must be a multiple of 128 (lane-dense)"
    assert N % 128 == 0, "N must be a multiple of 128 (no padding path)"

    # Keep >= 2 row tiles when possible so the "parallel" row axis can shard across
    # v7x's two TensorCores; reduction tile as large as fits the divisibility rule.
    bm = _pick_tile(N, min(block_m, N // 2 if N >= 256 else N))
    bk = _pick_tile(N, block_k)
    bm1 = _pick_tile(N, 512)

    cdt = jnp.bfloat16   # MXU-native operand dtype; accumulation stays f32

    # --- densify edge list -> int8 adjacency multiplicity mask (mask[trg, src]).
    # TODO(synk): multiplicities > 127 would saturate int8 (not expected for graphs).
    src, trg = edge_index[0], edge_index[1]
    mask = jnp.zeros((N, N), jnp.int32).at[trg, src].add(1).astype(jnp.int8)

    # --- fold per-head scoring vectors into (F_in, H) weights:
    #     s_src = x @ w_ssrc  ==  sum_f (x @ W_proj)[:,h,f] * a_src[h,f]
    wp_3d = params['w_proj'].reshape(f_in, H, F)
    w_ssrc = jnp.einsum('ihf,hf->ih', wp_3d, params['a_src'])    # (F_in, H) f32
    w_strg = jnp.einsum('ihf,hf->ih', wp_3d, params['a_trg'])    # (F_in, H) f32
    SC = _round_up(2 * H, 128)                                    # lane-dense score block
    w_all = jnp.concatenate(
        [params['w_proj'], params['w_skip'], w_ssrc, w_strg,
         jnp.zeros((f_in, SC - 2 * H), jnp.float32)], axis=1).astype(cdt)
    w_tot = 2 * HF + SC

    xb = x.astype(cdt)

    # --- Kernel 1: single wide matmul -> proj | skip | scores (all lane-dense).
    proj, skip, sc = pl.pallas_call(
        gat_proj_kernel,
        out_shape=(
            jax.ShapeDtypeStruct((N, HF), cdt),          # proj
            jax.ShapeDtypeStruct((N, HF), cdt),          # skip
            jax.ShapeDtypeStruct((N, SC), jnp.float32),  # [s_src | s_trg | 0-pad]
        ),
        grid=(N // bm1,),
        in_specs=[
            pl.BlockSpec((bm1, f_in), lambda i: (i, 0)),
            pl.BlockSpec((f_in, w_tot), lambda i: (0, 0)),
        ],
        out_specs=(
            pl.BlockSpec((bm1, HF), lambda i: (i, 0)),
            pl.BlockSpec((bm1, HF), lambda i: (i, 0)),
            pl.BlockSpec((bm1, SC), lambda i: (i, 0)),
        ),
        compiler_params=pltpu.CompilerParams(dimension_semantics=("parallel",)),
    )(xb, w_all)

    # Tiny (N, H) slices; transpose s_src so source scores lie along lanes.
    s_src_t = sc[:, :H].T          # (H, N) f32
    s_trg = sc[:, H:2 * H]         # (N, H) f32
    bias2d = params['bias'].astype(jnp.float32).reshape(1, HF)

    # --- Kernel 2: masked attention + aggregation + fused epilogue.
    out = pl.pallas_call(
        gat_attn_kernel,
        out_shape=jax.ShapeDtypeStruct((N, HF), jnp.float32),
        grid=(N // bm, N // bk),                     # (target rows, source reduction)
        in_specs=[
            pl.BlockSpec((bm, H), lambda i, k: (i, 0)),     # s_trg
            pl.BlockSpec((H, bk), lambda i, k: (0, k)),     # s_src (transposed)
            pl.BlockSpec((bm, bk), lambda i, k: (i, k)),    # int8 adjacency mask
            pl.BlockSpec((bk, HF), lambda i, k: (k, 0)),    # projected features (lane-dense)
            pl.BlockSpec((bm, HF), lambda i, k: (i, 0)),    # skip projection
            pl.BlockSpec((1, HF), lambda i, k: (0, 0)),     # bias
        ],
        out_specs=pl.BlockSpec((bm, HF), lambda i, k: (i, 0)),
        scratch_shapes=[
            pltpu.VMEM((bm, H), jnp.float32),    # running max (per head)
            pltpu.VMEM((bm, HF), jnp.float32),   # running denom (broadcast per head lanes)
            pltpu.VMEM((bm, HF), jnp.float32),   # lane-dense output accumulator
        ],
        compiler_params=pltpu.CompilerParams(
            dimension_semantics=("parallel", "arbitrary")),
    )(s_trg, s_src_t, mask, proj, skip, bias2d)

    return out


# ---------------------------------------------------------------------------
# Pure-JAX reference mirroring the PyTorch edge-list computation (eval mode).
# ---------------------------------------------------------------------------
def gat_reference(x, edge_index, params, num_heads, num_out_features):
    N = x.shape[0]
    H, F = num_heads, num_out_features
    proj = (x @ params['w_proj']).reshape(N, H, F)
    s_src = jnp.sum(proj * params['a_src'][None, :, :], axis=-1)     # (N, H)
    s_trg = jnp.sum(proj * params['a_trg'][None, :, :], axis=-1)     # (N, H)
    src, trg = edge_index[0], edge_index[1]
    scores = s_src[src] + s_trg[trg]                                  # (E, H)
    scores = jnp.where(scores >= 0.0, scores, 0.2 * scores)           # LeakyReLU(0.2)
    scores = scores - jnp.max(scores)
    exp_s = jnp.exp(scores)
    denom = jax.ops.segment_sum(exp_s, trg, num_segments=N)           # (N, H)
    attn = exp_s / (denom[trg] + 1e-16)                               # (E, H)
    weighted = proj[src] * attn[:, :, None]                           # (E, H, F)
    out = jax.ops.segment_sum(weighted, trg, num_segments=N)          # (N, H, F)
    out = out + (x @ params['w_skip']).reshape(N, H, F)               # skip_proj path
    out = out.reshape(N, H * F) + params['bias'][None, :]             # concat + bias
    return jnp.where(out > 0.0, out, jnp.expm1(out))                  # ELU


if __name__ == "__main__":
    key = jax.random.PRNGKey(0)
    k_x, k_a, k_wp, k_ws, k_as, k_at, k_b = jax.random.split(key, 7)

    N, F_IN, HEADS, F_OUT = 256, 64, 4, 32        # HEADS * F_OUT = 128 -> lane-dense concat

    x = jax.random.normal(k_x, (N, F_IN), jnp.float32)

    # Random sparse graph (~8% density) with self-loops, as a (2, E) edge list.
    adj = (jax.random.uniform(k_a, (N, N)) > 0.92).astype(jnp.float32)
    adj = jnp.maximum(adj, jnp.eye(N, dtype=jnp.float32))             # adj[i, j]=1 <=> edge j->i
    trg_idx, src_idx = jnp.nonzero(adj)
    edge_index = jnp.stack([src_idx, trg_idx]).astype(jnp.int32)      # (2, E) [src; trg]

    def xavier(k, shape):
        bound = math.sqrt(6.0 / (shape[0] + shape[-1]))
        return jax.random.uniform(k, shape, jnp.float32, minval=-bound, maxval=bound)

    params = {
        'w_proj': xavier(k_wp, (F_IN, HEADS * F_OUT)),
        'w_skip': xavier(k_ws, (F_IN, HEADS * F_OUT)),
        'a_src': xavier(k_as, (HEADS, F_OUT)),
        'a_trg': xavier(k_at, (HEADS, F_OUT)),
        'bias': 0.05 * jax.random.normal(k_b, (HEADS * F_OUT,), jnp.float32),
    }

    out = gat_layer_forward(x, edge_index, params,
                            num_heads=HEADS, num_out_features=F_OUT)
    out = jax.block_until_ready(out)

    ref = gat_reference(x, edge_index, params, HEADS, F_OUT)

    assert out.shape == (N, HEADS * F_OUT)
    assert bool(jnp.all(jnp.isfinite(out)))
    # bf16 MXU operands (f32 accumulation) -> compare at bf16-level tolerance.
    max_err = float(jnp.max(jnp.abs(out - ref)))
    assert jnp.allclose(out, ref, atol=5e-2, rtol=5e-2), f"max |err| = {max_err}"

    print("KERNEL_OK")
</pallas_src>

<mosaic_0001>
module attributes {stable_mosaic.version = 11 : i64} {
  func.func @gat_proj_kernel(%arg0: i32, %arg1: memref<256x64xbf16, #tpu.memory_space<vmem>>, %arg2: memref<64x384xbf16, #tpu.memory_space<vmem>>, %arg3: memref<256x128xbf16, #tpu.memory_space<vmem>>, %arg4: memref<256x128xbf16, #tpu.memory_space<vmem>>, %arg5: memref<256x128xf32, #tpu.memory_space<vmem>>) attributes {dimension_semantics = [#tpu.dimension_semantics<parallel>], iteration_bounds = array<i64: 1>, scalar_prefetch = 0 : i64, scratch_operands = 0 : i64, tpu.core_type = #tpu.core_type<tc>, window_params = [{transform_indices = @transform_0, window_bounds = array<i64: 256, 64>}, {pipeline_mode = #tpu.pipeline_mode<synchronous>, transform_indices = @transform_1, window_bounds = array<i64: 64, 384>}, {transform_indices = @transform_2, window_bounds = array<i64: 256, 128>}, {transform_indices = @transform_3, window_bounds = array<i64: 256, 128>}, {transform_indices = @transform_4, window_bounds = array<i64: 256, 128>}]} {
    %c0 = arith.constant 0 : index
    %c0_0 = arith.constant 0 : index
    %0 = vector.load %arg1[%c0, %c0_0] : memref<256x64xbf16, #tpu.memory_space<vmem>>, vector<256x64xbf16>
    %c0_1 = arith.constant 0 : index
    %c0_2 = arith.constant 0 : index
    %1 = vector.load %arg2[%c0_1, %c0_2] : memref<64x384xbf16, #tpu.memory_space<vmem>>, vector<64x384xbf16>
    %cst = arith.constant dense<0.000000e+00> : vector<256x384xf32>
    %2 = tpu.matmul %0, %1, %cst {dimension_numbers = #tpu.dot_dimension_numbers<[1], [0], [0], [1], [0, 0, 1, 1], [], []>} : vector<256x64xbf16>, vector<64x384xbf16>, vector<256x384xf32> -> vector<256x384xf32>
    %3 = vector.extract_strided_slice %2 {offsets = [0, 0], sizes = [256, 128], strides = [1, 1]} : vector<256x384xf32> to vector<256x128xf32>
    %4 = arith.truncf %3 : vector<256x128xf32> to vector<256x128xbf16>
    %c0_3 = arith.constant 0 : index
    %c0_4 = arith.constant 0 : index
    %5 = vector.load %arg3[%c0_3, %c0_4] : memref<256x128xbf16, #tpu.memory_space<vmem>>, vector<256x128xbf16>
    tpu.vector_store %arg3[%c0_3, %c0_4], %4 {strides = array<i32>} : memref<256x128xbf16, #tpu.memory_space<vmem>>, vector<256x128xbf16>,
    %6 = vector.extract_strided_slice %2 {offsets = [0, 128], sizes = [256, 128], strides = [1, 1]} : vector<256x384xf32> to vector<256x128xf32>
    %7 = arith.truncf %6 : vector<256x128xf32> to vector<256x128xbf16>
    %c0_5 = arith.constant 0 : index
    %c0_6 = arith.constant 0 : index
    %8 = vector.load %arg4[%c0_5, %c0_6] : memref<256x128xbf16, #tpu.memory_space<vmem>>, vector<256x128xbf16>
    tpu.vector_store %arg4[%c0_5, %c0_6], %7 {strides = array<i32>} : memref<256x128xbf16, #tpu.memory_space<vmem>>, vector<256x128xbf16>,
    %9 = vector.extract_strided_slice %2 {offsets = [0, 256], sizes = [256, 128], strides = [1, 1]} : vector<256x384xf32> to vector<256x128xf32>
    %c0_7 = arith.constant 0 : index
    %c0_8 = arith.constant 0 : index
    %10 = vector.load %arg5[%c0_7, %c0_8] : memref<256x128xf32, #tpu.memory_space<vmem>>, vector<256x128xf32>
    tpu.vector_store %arg5[%c0_7, %c0_8], %9 {strides = array<i32>} : memref<256x128xf32, #tpu.memory_space<vmem>>, vector<256x128xf32>,
    return
  }
  func.func @transform_0(%arg0: i32) -> (i32, i32) {
    %c0_i32 = arith.constant 0 : i32
    %c0_i32_0 = arith.constant 0 : i32
    return %arg0, %c0_i32 : i32, i32
  }
  func.func @transform_1(%arg0: i32) -> (i32, i32) {
    %c0_i32 = arith.constant 0 : i32
    %c0_i32_0 = arith.constant 0 : i32
    %c0_i32_1 = arith.constant 0 : i32
    return %c0_i32, %c0_i32_0 : i32, i32
  }
  func.func @transform_2(%arg0: i32) -> (i32, i32) {
    %c0_i32 = arith.constant 0 : i32
    %c0_i32_0 = arith.constant 0 : i32
    return %arg0, %c0_i32 : i32, i32
  }
  func.func @transform_3(%arg0: i32) -> (i32, i32) {
    %c0_i32 = arith.constant 0 : i32
    %c0_i32_0 = arith.constant 0 : i32
    return %arg0, %c0_i32 : i32, i32
  }
  func.func @transform_4(%arg0: i32) -> (i32, i32) {
    %c0_i32 = arith.constant 0 : i32
    %c0_i32_0 = arith.constant 0 : i32
    return %arg0, %c0_i32 : i32, i32
  }
}

</mosaic_0001>

<bundles_post_ra>
// kernel: tpu_custom_call.1
= control target key start
LH: loop header
LB: loop body
LE: loop exit
PB: predicated region body
PF: predicated region fallthrough
CT: control target
= control target key end

     0   :  { %10 = vsyncpa [#allocation3], 0  ;;  %v1567_v2 = vmov 0   ;;  %vm209_vm0 = vcmask 523264   ;;  %s1786_s0 = inlined_call_operand.vmem [shape: bf16[256,64], index: 0, kind: input, shape index: {}]   ;;  %s1787_s1 = inlined_call_operand.vmem [shape: bf16[64,384], index: 1, kind: input, shape index: {}]   ;;  %s1788_s2 = inlined_call_operand.hbm [shape: bf16[256,128], index: 2, kind: output, shape index: {0}]   ;;  %s1789_s3 = inlined_call_operand.hbm [shape: bf16[256,128], index: 3, kind: output, shape index: {1}]   ;;  %s1790_s4 = inlined_call_operand.hbm [shape: f32[256,128], index: 4, kind: output, shape index: {2}]  }
   0x1   :  { %v1465_v0 = vld [vmem:[%s1787_s1 + $0x4] ss:$12 sps:$4 sm:$0xff]   ;;  %v1467_v1 = vld [vmem:[%s1787_s1] ss:$12 sps:$4 sm:$0xff]   ;;  %290 = vmatprep.mubr.bf16.mxu0 %v1567_v2  ;;  %410 = vmatprep.mubr.bf16.mxu1 %v1567_v2  ;;  %v1468_v3 = vld [vmem:[%s1787_s1 + $0x1c] ss:$12 sps:$4 sm:$0xff]  }
   0x2   :  { %258 = vmatprep.subr.bf16.mxu0 %v1465_v0  ;;  %1449 = vmatprep.subr.bf16.mxu1 %v1465_v0  ;;  %v1470_v4 = vld [vmem:[%s1787_s1 + $0x18] ss:$12 sps:$4 sm:$0xff]   ;;  %v1471_v5 = vld [vmem:[%s1787_s1 + $0x34] ss:$12 sps:$4 sm:$0xff]   ;;  %v1473_v6 = vld [vmem:[%s1787_s1 + $0x30] ss:$12 sps:$4 sm:$0xff]  }
   0x3   :  { %259 = vmatpush1.bf16.msra.mxu0 %v1467_v1  ;;  %1453 = vmatpush1.bf16.msra.mxu1 %v1467_v1  ;;  %v1474_v7 = vld [vmem:[%s1787_s1 + $0x4c] ss:$12 sps:$4 sm:$0xff]   ;;  %v1476_v8 = vld [vmem:[%s1787_s1 + $0x48] ss:$12 sps:$4 sm:$0xff]   ;;  %v1477_v10 = vld [vmem:[%s1786_s0] sm:$0xff]  }
   0x4   :  { %260 = vmatprep.subr.bf16.mxu0 %v1468_v3  ;;  %1450 = vmatprep.subr.bf16.mxu1 %v1468_v3  ;;  %v1479_v9 = vld [vmem:[%s1787_s1 + $0x8] ss:$12 sps:$4 sm:$0xff]   ;;  %v1635_v11 = vld [vmem:[%s1786_s0 + $0x60] sm:$0xff]   ;;  %v1488_v16 = vld [vmem:[%s1787_s1 + $0x50] ss:$12 sps:$4 sm:$0xff]  }
   0x5   :  { %v1482_v12 = vld [vmem:[%s1787_s1 + $0x20] ss:$12 sps:$4 sm:$0xff]   ;;  %v1485_v13 = vld [vmem:[%s1787_s1 + $0x38] ss:$12 sps:$4 sm:$0xff]  }
   0x6   :  { %v1480_v14 = vld [vmem:[%s1786_s0 + $0x8] sm:$0xff]  }
   0x7   :  { %261 = vmatpush1.bf16.msra.mxu0 %v1470_v4  ;;  %1454 = vmatpush1.bf16.msra.mxu1 %v1470_v4  ;;  %v1481_v15 = vld [vmem:[%s1786_s0 + $0x68] sm:$0xff]  }
   0x8   :  { %262 = vmatprep.subr.bf16.mxu0 %v1471_v5  ;;  %1451 = vmatprep.subr.bf16.mxu1 %v1471_v5 }
   0xb   :  { %263 = vmatpush1.bf16.msra.mxu0 %v1473_v6  ;;  %1455 = vmatpush1.bf16.msra.mxu1 %v1473_v6 }
   0xc   :  { %264 = vmatprep.subr.bf16.mxu0 %v1474_v7  ;;  %1452 = vmatprep.subr.bf16.mxu1 %v1474_v7 }
   0xf   :  { %265 = vmatpush1.bf16.msra.mxu0 %v1476_v8  ;;  %1456 = vmatpush1.bf16.msra.mxu1 %v1476_v8 }
  0x10   :  { %1409 = vmatprep.subr.bf16.mxu1 %v1479_v9 }
  0x12   :  { %1039 = vmatmul.mubr.msk.bf16.vlgmr.msra.gmra.mrb[0].mxu0 %vm209_vm0, %v1477_v10  ;;  %1051 = vmatmul.mubr.msk.bf16.vlgmr.msra.gmra.mrb[0].mxu1 %vm209_vm0, %v1635_v11 }
  0x13   :  { %1410 = vmatpush3.bf16.msra.mxu1 %v1479_v9  ;;  %300 = vmatprep.mubr.bf16.mxu0 %v1567_v2 }
  0x14   :  { %420 = vmatprep.mubr.bf16.mxu1 %v1567_v2  ;;  %1411 = vmatprep.subr.bf16.mxu1 %v1482_v12 }
  0x17   :  { %1412 = vmatpush3.bf16.msra.mxu1 %v1482_v12 }
  0x18   :  { %1413 = vmatprep.subr.bf16.mxu1 %v1485_v13 }
  0x19   :  { %11 = vsyncpa [#allocation5], 0  ;;  %v1483_v17 = vld [vmem:[%s1786_s0 + $0x10] sm:$0xff]   ;;  %v1486_v19 = vld [vmem:[%s1786_s0 + $0x18] sm:$0xff]   ;;  %s1569_s19 = smov [#allocation4]   ;;  %s1570_s21 = smov [#allocation6]  }
  0x1a   :  { %1040 = vmatmul.mubr.msk.bf16.gmra.mrb[4].mxu0 %vm209_vm0, %v1480_v14  ;;  %1052 = vmatmul.mubr.msk.bf16.gmra.mrb[4].mxu1 %vm209_vm0, %v1481_v15  ;;  %v1484_v18 = vld [vmem:[%s1786_s0 + $0x70] sm:$0xff]   ;;  %v1487_v20 = vld [vmem:[%s1786_s0 + $0x78] sm:$0xff]   ;;  %v1489_v21 = vld [vmem:[%s1786_s0 + $0x20] sm:$0xff]   ;;  %s981_s20 = sshll.u32 %s1569_s19, 4  ;;  %s993_s22 = sshll.u32 %s1570_s21, 4  ;;  %s1736_s20 = int_to_ptr.vmem [resolvable:$true] %s981_s20  ;;  %s1738_s22 = int_to_ptr.vmem [resolvable:$true] %s993_s22 }
  0x1b   :  { %310 = vmatprep.mubr.bf16.mxu0 %v1567_v2  ;;  %430 = vmatprep.mubr.bf16.mxu1 %v1567_v2  ;;  %v1490_v22 = vld [vmem:[%s1786_s0 + $0x28] sm:$0xff]   ;;  %v1491_v23 = vld [vmem:[%s1786_s0 + $0x30] sm:$0xff]   ;;  %v1492_v24 = vld [vmem:[%s1786_s0 + $0x38] sm:$0xff]  }
  0x1c   :  { %1414 = vmatpush3.bf16.msra.mxu1 %v1485_v13  ;;  %v1493_v25 = vld [vmem:[%s1786_s0 + $0x40] sm:$0xff]   ;;  %v1494_v26 = vld [vmem:[%s1786_s0 + $0x48] sm:$0xff]   ;;  %v1495_v27 = vld [vmem:[%s1786_s0 + $0x50] sm:$0xff]  }
  0x1d   :  { %1415 = vmatprep.subr.bf16.mxu1 %v1488_v16  ;;  %v1496_v28 = vld [vmem:[%s1786_s0 + $0x58] sm:$0xff]   ;;  %s1568_s0 = smov [#allocation2]  }
  0x1e   :  { %s969_s18 = sshll.u32 %s1568_s0, 4  ;;  %s970_s18 = int_to_ptr.vmem [resolvable:$true] %s969_s18 }
  0x1f   :  { %s1497_s23 = scalar_lea.vmem %s970_s18, 2048  ;;  %p1502_p1 = scmp.lt.s32.totalorder %s970_s18, %s970_s18 }
  0x20   :  { %1416 = vmatpush3.bf16.msra.mxu1 %v1488_v16  ;;  %p1498_p0 = scmp.ne.s32.totalorder %s970_s18, %s1497_s23  ;;  %p1503_p2 = scmp.lt.s32.totalorder %s1497_s23, %s1497_s23 }
  0x22   :  { %1041 = vmatmul.mubr.msk.bf16.gmra.mrb[8].mxu0 %vm209_vm0, %v1483_v17  ;;  %1053 = vmatmul.mubr.msk.bf16.gmra.mrb[8].mxu1 %vm209_vm0, %v1484_v18  ;;  %p1504_p3 = por %p1503_p2, %p1502_p1 }
  0x23   :  { %320 = vmatprep.mubr.bf16.mxu0 %v1567_v2  ;;  %440 = vmatprep.mubr.bf16.mxu1 %v1567_v2 }
  0x24   :  { %p1505_p4 = pnand %p1504_p3, %p1498_p0 }
  0x2a   :  { %1042 = vmatmul.mubr.msk.bf16.gmra.mrb[12].mxu0 %vm209_vm0, %v1486_v19  ;;  %1054 = vmatmul.mubr.msk.bf16.gmra.mrb[12].mxu1 %vm209_vm0, %v1487_v20 }
  0x2b   :  { %330 = vmatprep.mubr.bf16.mxu0 %v1567_v2  ;;  %1417 = vmatprep.mubr.msk.bf16.mxu1 %vm209_vm0, %v1477_v10 }
  0x32   :  { %1043 = vmatmul.mubr.msk.bf16.gmra.mrb[16].mxu0 %vm209_vm0, %v1489_v21  ;;  %1418 = vmatmul.mubr.msk.bf16.vlgmr.msra.gmra.mrb[16].mxu1 %vm209_vm0, %v1480_v14 }
  0x33   :  { %340 = vmatprep.mubr.bf16.mxu0 %v1567_v2  ;;  %1421 = vmatprep.mubr.msk.bf16.mxu1 %vm209_vm0, %v1483_v17 }
  0x3a   :  { %1044 = vmatmul.mubr.msk.bf16.gmra.mrb[20].mxu0 %vm209_vm0, %v1490_v22  ;;  %1422 = vmatmul.mubr.msk.bf16.gmra.mrb[20].mxu1 %vm209_vm0, %v1486_v19 }
  0x3b   :  { %350 = vmatprep.mubr.bf16.mxu0 %v1567_v2  ;;  %1425 = vmatprep.mubr.msk.bf16.mxu1 %vm209_vm0, %v1489_v21 }
  0x42   :  { %1045 = vmatmul.mubr.msk.bf16.gmra.mrb[24].mxu0 %vm209_vm0, %v1491_v23  ;;  %1426 = vmatmul.mubr.msk.bf16.gmra.mrb[24].mxu1 %vm209_vm0, %v1490_v22 }
  0x43   :  { %360 = vmatprep.mubr.bf16.mxu0 %v1567_v2  ;;  %1429 = vmatprep.mubr.msk.bf16.mxu1 %vm209_vm0, %v1491_v23 }
  0x4a   :  { %1046 = vmatmul.mubr.msk.bf16.gmra.mrb[28].mxu0 %vm209_vm0, %v1492_v24  ;;  %1430 = vmatmul.mubr.msk.bf16.gmra.mrb[28].mxu1 %vm209_vm0, %v1492_v24 }
  0x4b   :  { %370 = vmatprep.mubr.bf16.mxu0 %v1567_v2  ;;  %1433 = vmatprep.mubr.msk.bf16.mxu1 %vm209_vm0, %v1493_v25 }
  0x52   :  { %1047 = vmatmul.mubr.msk.bf16.gmra.mrb[32].mxu0 %vm209_vm0, %v1493_v25  ;;  %1434 = vmatmul.mubr.msk.bf16.gmra.mrb[32].mxu1 %vm209_vm0, %v1494_v26 }
  0x53   :  { %380 = vmatprep.mubr.bf16.mxu0 %v1567_v2  ;;  %1437 = vmatprep.mubr.msk.bf16.mxu1 %vm209_vm0, %v1495_v27 }
  0x5a   :  { %1048 = vmatmul.mubr.msk.bf16.gmra.mrb[36].mxu0 %vm209_vm0, %v1494_v26  ;;  %1438 = vmatmul.mubr.msk.bf16.gmra.mrb[36].mxu1 %vm209_vm0, %v1496_v28 }
  0x5b   :  { %390 = vmatprep.mubr.bf16.mxu0 %v1567_v2  ;;  %1441 = vmatprep.mubr.msk.bf16.mxu1 %vm209_vm0, %v1635_v11 }
  0x62   :  { %1049 = vmatmul.mubr.msk.bf16.gmra.mrb[40].mxu0 %vm209_vm0, %v1495_v27  ;;  %1442 = vmatmul.mubr.msk.bf16.gmra.mrb[40].mxu1 %vm209_vm0, %v1481_v15 }
  0x63   :  { %400 = vmatprep.mubr.bf16.mxu0 %v1567_v2  ;;  %1445 = vmatprep.mubr.msk.bf16.mxu1 %vm209_vm0, %v1484_v18 }
  0x6a   :  { %1050 = vmatmul.mubr.msk.bf16.gmra.mrb[44].mxu0 %vm209_vm0, %v1496_v28  ;;  %1446 = vmatmul.mubr.msk.bf16.gmra.mrb[44].mxu1 %vm209_vm0, %v1487_v20 }
  0xe5   :  { %v292_v29 = vpop.f32.mrb[0].mxu0  ;;  %v412_v30 = vpop.f32.mrb[0].mxu1 }
  0xe6   :  { %v294_v31 = vpop.f32.mrb[1].mxu0  ;;  %v414_v32 = vpop.f32.mrb[1].mxu1 }
  0xe7   :  { %v296_v33 = vpop.f32.mrb[2].mxu0  ;;  %v416_v34 = vpop.f32.mrb[2].mxu1 }
  0xe8   :  { %v1202_v35 = vpack.c.bf16 %v296_v33, %v292_v29  ;;  %v1262_v36 = vpack.c.bf16 %v416_v34, %v412_v30  ;;  %v298_v37 = vpop.f32.mrb[3].mxu0  ;;  %v418_v38 = vpop.f32.mrb[3].mxu1 }
  0xe9   :  { %v1282_v39 = vpack.c.bf16 %v298_v37, %v294_v31  ;;  %v1342_v40 = vpack.c.bf16 %v418_v38, %v414_v32 }
  0xea   :  { %1203 = vst [vmem:[#allocation2] sm:$0xff] %v1202_v35   ;;  %1370 = vst [vmem:[#allocation2 + $0x60] sm:$0xff] %v1262_v36  }
  0xeb   :  { %1283 = vst [vmem:[#allocation4] sm:$0xff] %v1282_v39   ;;  %1385 = vst [vmem:[#allocation4 + $0x60] sm:$0xff] %v1342_v40  }
  0xed   :  { %v302_v41 = vpop.f32.mrb[4].mxu0  ;;  %v422_v42 = vpop.f32.mrb[4].mxu1 }
  0xee   :  { %v304_v43 = vpop.f32.mrb[5].mxu0  ;;  %v424_v44 = vpop.f32.mrb[5].mxu1 }
  0xef   :  { %v306_v45 = vpop.f32.mrb[6].mxu0  ;;  %v426_v46 = vpop.f32.mrb[6].mxu1 }
  0xf0   :  { %v1207_v47 = vpack.c.bf16 %v306_v45, %v302_v41  ;;  %v1267_v48 = vpack.c.bf16 %v426_v46, %v422_v42  ;;  %v308_v49 = vpop.f32.mrb[7].mxu0  ;;  %v428_v50 = vpop.f32.mrb[7].mxu1 }
  0xf1   :  { %v1287_v51 = vpack.c.bf16 %v308_v49, %v304_v43  ;;  %v1347_v52 = vpack.c.bf16 %v428_v50, %v424_v44 }
  0xf2   :  { %1359 = vst [vmem:[#allocation2 + $0x8] sm:$0xff] %v1207_v47   ;;  %1371 = vst [vmem:[#allocation2 + $0x68] sm:$0xff] %v1267_v48  }
  0xf3   :  { %1374 = vst [vmem:[#allocation4 + $0x8] sm:$0xff] %v1287_v51   ;;  %1386 = vst [vmem:[#allocation4 + $0x68] sm:$0xff] %v1347_v52  }
  0xf5   :  { %v312_v53 = vpop.f32.mrb[8].mxu0  ;;  %v432_v54 = vpop.f32.mrb[8].mxu1 }
  0xf6   :  { %v314_v55 = vpop.f32.mrb[9].mxu0  ;;  %v434_v56 = vpop.f32.mrb[9].mxu1 }
  0xf7   :  { %v316_v57 = vpop.f32.mrb[10].mxu0  ;;  %v436_v58 = vpop.f32.mrb[10].mxu1 }
  0xf8   :  { %v1212_v59 = vpack.c.bf16 %v316_v57, %v312_v53  ;;  %v1272_v60 = vpack.c.bf16 %v436_v58, %v432_v54  ;;  %v318_v61 = vpop.f32.mrb[11].mxu0  ;;  %v438_v62 = vpop.f32.mrb[11].mxu1 }
  0xf9   :  { %v1292_v63 = vpack.c.bf16 %v318_v61, %v314_v55  ;;  %v1352_v0 = vpack.c.bf16 %v438_v62, %v434_v56 }
  0xfa   :  { %1360 = vst [vmem:[#allocation2 + $0x10] sm:$0xff] %v1212_v59   ;;  %1372 = vst [vmem:[#allocation2 + $0x70] sm:$0xff] %v1272_v60  }
  0xfb   :  { %1375 = vst [vmem:[#allocation4 + $0x10] sm:$0xff] %v1292_v63   ;;  %1387 = vst [vmem:[#allocation4 + $0x70] sm:$0xff] %v1352_v0  }
  0xfd   :  { %v322_v1 = vpop.f32.mrb[12].mxu0  ;;  %v442_v2 = vpop.f32.mrb[12].mxu1 }
  0xfe   :  { %v324_v3 = vpop.f32.mrb[13].mxu0  ;;  %v444_v4 = vpop.f32.mrb[13].mxu1 }
  0xff   :  { %v326_v5 = vpop.f32.mrb[14].mxu0  ;;  %v446_v6 = vpop.f32.mrb[14].mxu1 }
 0x100   :  { %v1217_v7 = vpack.c.bf16 %v326_v5, %v322_v1  ;;  %v1277_v8 = vpack.c.bf16 %v446_v6, %v442_v2  ;;  %v328_v9 = vpop.f32.mrb[15].mxu0  ;;  %v448_v10 = vpop.f32.mrb[15].mxu1 }
 0x101   :  { %v1297_v11 = vpack.c.bf16 %v328_v9, %v324_v3  ;;  %v1357_v12 = vpack.c.bf16 %v448_v10, %v444_v4 }
 0x102   :  { %1361 = vst [vmem:[#allocation2 + $0x18] sm:$0xff] %v1217_v7   ;;  %1373 = vst [vmem:[#allocation2 + $0x78] sm:$0xff] %v1277_v8  }
 0x103   :  { %1376 = vst [vmem:[#allocation4 + $0x18] sm:$0xff] %v1297_v11   ;;  %1388 = vst [vmem:[#allocation4 + $0x78] sm:$0xff] %v1357_v12  }
 0x105   :  { %v332_v13 = vpop.f32.mrb[16].mxu0  ;;  %v1419_v14 = vpop.f32.mrb[16].mxu1 }
 0x106   :  { %934 = vst [vmem:[#allocation6 + $0x10] sm:$0xff] %v1419_v14  ;;  %v334_v15 = vpop.f32.mrb[17].mxu0  ;;  %v485_v16 = vpop.f32.mrb[17].mxu1 }
 0x107   :  { %932 = vst [vmem:[#allocation6] sm:$0xff] %v485_v16  ;;  %v336_v17 = vpop.f32.mrb[18].mxu0  ;;  %v1420_v18 = vpop.f32.mrb[18].mxu1 }
 0x108   :  { %v1222_v19 = vpack.c.bf16 %v336_v17, %v332_v13  ;;  %935 = vst [vmem:[#allocation6 + $0x18] sm:$0xff] %v1420_v18  ;;  %v338_v20 = vpop.f32.mrb[19].mxu0  ;;  %v488_v21 = vpop.f32.mrb[19].mxu1 }
 0x109   :  { %v1302_v22 = vpack.c.bf16 %v338_v20, %v334_v15  ;;  %933 = vst [vmem:[#allocation6 + $0x8] sm:$0xff] %v488_v21 }
 0x10a   :  { %1362 = vst [vmem:[#allocation2 + $0x20] sm:$0xff] %v1222_v19  }
 0x10b   :  { %1377 = vst [vmem:[#allocation4 + $0x20] sm:$0xff] %v1302_v22  }
 0x10d   :  { %v342_v23 = vpop.f32.mrb[20].mxu0  ;;  %v1423_v24 = vpop.f32.mrb[20].mxu1 }
 0x10e   :  { %938 = vst [vmem:[#allocation6 + $0x30] sm:$0xff] %v1423_v24  ;;  %v344_v25 = vpop.f32.mrb[21].mxu0  ;;  %v501_v26 = vpop.f32.mrb[21].mxu1 }
 0x10f   :  { %936 = vst [vmem:[#allocation6 + $0x20] sm:$0xff] %v501_v26  ;;  %v346_v27 = vpop.f32.mrb[22].mxu0  ;;  %v1424_v28 = vpop.f32.mrb[22].mxu1 }
 0x110   :  { %v1227_v29 = vpack.c.bf16 %v346_v27, %v342_v23  ;;  %939 = vst [vmem:[#allocation6 + $0x38] sm:$0xff] %v1424_v28  ;;  %v348_v30 = vpop.f32.mrb[23].mxu0  ;;  %v504_v31 = vpop.f32.mrb[23].mxu1 }
 0x111   :  { %v1307_v32 = vpack.c.bf16 %v348_v30, %v344_v25  ;;  %937 = vst [vmem:[#allocation6 + $0x28] sm:$0xff] %v504_v31 }
 0x112   :  { %1363 = vst [vmem:[#allocation2 + $0x28] sm:$0xff] %v1227_v29  }
 0x113   :  { %1378 = vst [vmem:[#allocation4 + $0x28] sm:$0xff] %v1307_v32  }
 0x115   :  { %v352_v33 = vpop.f32.mrb[24].mxu0  ;;  %v1427_v34 = vpop.f32.mrb[24].mxu1 }
 0x116   :  { %942 = vst [vmem:[#allocation6 + $0x50] sm:$0xff] %v1427_v34  ;;  %v354_v35 = vpop.f32.mrb[25].mxu0  ;;  %v517_v36 = vpop.f32.mrb[25].mxu1 }
 0x117   :  { %940 = vst [vmem:[#allocation6 + $0x40] sm:$0xff] %v517_v36  ;;  %v356_v37 = vpop.f32.mrb[26].mxu0  ;;  %v1428_v38 = vpop.f32.mrb[26].mxu1 }
 0x118   :  { %v1232_v39 = vpack.c.bf16 %v356_v37, %v352_v33  ;;  %943 = vst [vmem:[#allocation6 + $0x58] sm:$0xff] %v1428_v38  ;;  %v358_v40 = vpop.f32.mrb[27].mxu0  ;;  %v520_v41 = vpop.f32.mrb[27].mxu1 }
 0x119   :  { %v1312_v42 = vpack.c.bf16 %v358_v40, %v354_v35  ;;  %941 = vst [vmem:[#allocation6 + $0x48] sm:$0xff] %v520_v41 }
 0x11a   :  { %1364 = vst [vmem:[#allocation2 + $0x30] sm:$0xff] %v1232_v39  }
 0x11b   :  { %1379 = vst [vmem:[#allocation4 + $0x30] sm:$0xff] %v1312_v42  }
 0x11d   :  { %v362_v43 = vpop.f32.mrb[28].mxu0  ;;  %v1431_v44 = vpop.f32.mrb[28].mxu1 }
 0x11e   :  { %946 = vst [vmem:[#allocation6 + $0x70] sm:$0xff] %v1431_v44  ;;  %v364_v45 = vpop.f32.mrb[29].mxu0  ;;  %v533_v46 = vpop.f32.mrb[29].mxu1 }
 0x11f   :  { %944 = vst [vmem:[#allocation6 + $0x60] sm:$0xff] %v533_v46  ;;  %v366_v47 = vpop.f32.mrb[30].mxu0  ;;  %v1432_v48 = vpop.f32.mrb[30].mxu1 }
 0x120   :  { %v1237_v49 = vpack.c.bf16 %v366_v47, %v362_v43  ;;  %947 = vst [vmem:[#allocation6 + $0x78] sm:$0xff] %v1432_v48  ;;  %v368_v50 = vpop.f32.mrb[31].mxu0  ;;  %v536_v51 = vpop.f32.mrb[31].mxu1 }
 0x121   :  { %v1317_v52 = vpack.c.bf16 %v368_v50, %v364_v45  ;;  %945 = vst [vmem:[#allocation6 + $0x68] sm:$0xff] %v536_v51 }
 0x122   :  { %1365 = vst [vmem:[#allocation2 + $0x38] sm:$0xff] %v1237_v49  }
 0x123   :  { %1380 = vst [vmem:[#allocation4 + $0x38] sm:$0xff] %v1317_v52  }
 0x125   :  { %v372_v53 = vpop.f32.mrb[32].mxu0  ;;  %v1435_v54 = vpop.f32.mrb[32].mxu1 }
 0x126   :  { %950 = vst [vmem:[#allocation6 + $0x90] sm:$0xff] %v1435_v54  ;;  %v374_v55 = vpop.f32.mrb[33].mxu0  ;;  %v549_v56 = vpop.f32.mrb[33].mxu1 }
 0x127   :  { %948 = vst [vmem:[#allocation6 + $0x80] sm:$0xff] %v549_v56  ;;  %v376_v57 = vpop.f32.mrb[34].mxu0  ;;  %v1436_v58 = vpop.f32.mrb[34].mxu1 }
 0x128   :  { %v1242_v59 = vpack.c.bf16 %v376_v57, %v372_v53  ;;  %951 = vst [vmem:[#allocation6 + $0x98] sm:$0xff] %v1436_v58  ;;  %v378_v60 = vpop.f32.mrb[35].mxu0  ;;  %v552_v61 = vpop.f32.mrb[35].mxu1 }
 0x129   :  { %v1322_v62 = vpack.c.bf16 %v378_v60, %v374_v55  ;;  %949 = vst [vmem:[#allocation6 + $0x88] sm:$0xff] %v552_v61 }
 0x12a   :  { %1366 = vst [vmem:[#allocation2 + $0x40] sm:$0xff] %v1242_v59  }
 0x12b   :  { %1381 = vst [vmem:[#allocation4 + $0x40] sm:$0xff] %v1322_v62  }
 0x12d   :  { %v382_v63 = vpop.f32.mrb[36].mxu0  ;;  %v1439_v0 = vpop.f32.mrb[36].mxu1 }
 0x12e   :  { %954 = vst [vmem:[#allocation6 + $0xb0] sm:$0xff] %v1439_v0  ;;  %v384_v1 = vpop.f32.mrb[37].mxu0  ;;  %v565_v2 = vpop.f32.mrb[37].mxu1 }
 0x12f   :  { %952 = vst [vmem:[#allocation6 + $0xa0] sm:$0xff] %v565_v2  ;;  %v386_v3 = vpop.f32.mrb[38].mxu0  ;;  %v1440_v4 = vpop.f32.mrb[38].mxu1 }
 0x130   :  { %v1247_v5 = vpack.c.bf16 %v386_v3, %v382_v63  ;;  %955 = vst [vmem:[#allocation6 + $0xb8] sm:$0xff] %v1440_v4  ;;  %v388_v6 = vpop.f32.mrb[39].mxu0  ;;  %v568_v7 = vpop.f32.mrb[39].mxu1 }
 0x131   :  { %v1327_v8 = vpack.c.bf16 %v388_v6, %v384_v1  ;;  %953 = vst [vmem:[#allocation6 + $0xa8] sm:$0xff] %v568_v7 }
 0x132   :  { %1367 = vst [vmem:[#allocation2 + $0x48] sm:$0xff] %v1247_v5  }
 0x133   :  { %1382 = vst [vmem:[#allocation4 + $0x48] sm:$0xff] %v1327_v8  }
 0x135   :  { %v392_v9 = vpop.f32.mrb[40].mxu0  ;;  %v1443_v10 = vpop.f32.mrb[40].mxu1 }
 0x136   :  { %958 = vst [vmem:[#allocation6 + $0xd0] sm:$0xff] %v1443_v10  ;;  %v394_v11 = vpop.f32.mrb[41].mxu0  ;;  %v581_v12 = vpop.f32.mrb[41].mxu1 }
 0x137   :  { %956 = vst [vmem:[#allocation6 + $0xc0] sm:$0xff] %v581_v12  ;;  %v396_v13 = vpop.f32.mrb[42].mxu0  ;;  %v1444_v14 = vpop.f32.mrb[42].mxu1 }
 0x138   :  { %v1252_v15 = vpack.c.bf16 %v396_v13, %v392_v9  ;;  %959 = vst [vmem:[#allocation6 + $0xd8] sm:$0xff] %v1444_v14  ;;  %v398_v16 = vpop.f32.mrb[43].mxu0  ;;  %v584_v17 = vpop.f32.mrb[43].mxu1 }
 0x139   :  { %v1332_v18 = vpack.c.bf16 %v398_v16, %v394_v11  ;;  %957 = vst [vmem:[#allocation6 + $0xc8] sm:$0xff] %v584_v17 }
 0x13a   :  { %1368 = vst [vmem:[#allocation2 + $0x50] sm:$0xff] %v1252_v15  }
 0x13b   :  { %1383 = vst [vmem:[#allocation4 + $0x50] sm:$0xff] %v1332_v18  }
 0x13d   :  { %v402_v19 = vpop.f32.mrb[44].mxu0  ;;  %v1447_v20 = vpop.f32.mrb[44].mxu1 }
 0x13e   :  { %962 = vst [vmem:[#allocation6 + $0xf0] sm:$0xff] %v1447_v20  ;;  %v404_v21 = vpop.f32.mrb[45].mxu0  ;;  %v597_v22 = vpop.f32.mrb[45].mxu1 }
 0x13f   :  { %960 = vst [vmem:[#allocation6 + $0xe0] sm:$0xff] %v597_v22  ;;  %v406_v23 = vpop.f32.mrb[46].mxu0  ;;  %v1448_v24 = vpop.f32.mrb[46].mxu1 }
 0x140   :  { %v1257_v25 = vpack.c.bf16 %v406_v23, %v402_v19  ;;  %963 = vst [vmem:[#allocation6 + $0xf8] sm:$0xff] %v1448_v24  ;;  %v408_v26 = vpop.f32.mrb[47].mxu0  ;;  %v600_v27 = vpop.f32.mrb[47].mxu1 }
 0x141   :  { %v1337_v28 = vpack.c.bf16 %v408_v26, %v404_v21  ;;  %961 = vst [vmem:[#allocation6 + $0xe8] sm:$0xff] %v600_v27 }
 0x142   :  { %1369 = vst [vmem:[#allocation2 + $0x58] sm:$0xff] %v1257_v25  }
 0x143   :  { %1384 = vst [vmem:[#allocation4 + $0x58] sm:$0xff] %v1337_v28  }
 0x144   :  { %1508 = shalt.err (!%p1505_p4)
}
 0x145   :  { %s1509_s25 = scalar_lea.hbm %s1788_s2, 2048 }
 0x146   :  { %p1510_p5 = scmp.ne.s32.totalorder %s1788_s2, %s1509_s25  ;;  %p1513_p6 = scmp.lt.u32.totalorder %s1509_s25, %s1788_s2 }
 0x148   :  { %p1515_p7 = pnand %p1513_p6, %p1510_p5 }
 0x14a   :  { %1518 = shalt.err (!%p1515_p7)
}
 0x14b   :  { %s1571_s30 = smov 64   ;;  %s1572_s5 = smov 4  }
 0x14c   :  { %975 = dma.vmem_to_hbm [thread:$0]  %s970_s18, 2048, %s1788_s2, [#allocation3], %s1571_s30, %s1571_s30, %s1572_s5  }
 0x14d   :  { %s1519_s8 = scalar_lea.vmem %s1736_s20, 2048  ;;  %p1524_p9 = scmp.lt.s32.totalorder %s1736_s20, %s1736_s20 }
 0x14e   :  { %p1520_p8 = scmp.ne.s32.totalorder %s1736_s20, %s1519_s8  ;;  %p1525_p10 = scmp.lt.s32.totalorder %s1519_s8, %s1519_s8 }
 0x150   :  { %p1526_p11 = por %p1525_p10, %p1524_p9 }
 0x152   :  { %p1527_p12 = pnand %p1526_p11, %p1520_p8 }
 0x154   :  { %1530 = shalt.err (!%p1527_p12)
}
 0x155   :  { %s1531_s11 = scalar_lea.hbm %s1789_s3, 2048 }
 0x156   :  { %p1532_p13 = scmp.ne.s32.totalorder %s1789_s3, %s1531_s11  ;;  %p1535_p0 = scmp.lt.u32.totalorder %s1531_s11, %s1789_s3 }
 0x158   :  { %p1537_p1 = pnand %p1535_p0, %p1532_p13 }
 0x15a   :  { %1540 = shalt.err (!%p1537_p1)
}
 0x15b   :  { %987 = dma.vmem_to_hbm [thread:$0]  %s1736_s20, 2048, %s1789_s3, [#allocation5], %s1571_s30, %s1571_s30, %s1572_s5  }
 0x15c   :  { %s1541_s17 = scalar_lea.vmem %s1738_s22, 4096  ;;  %p1546_p3 = scmp.lt.s32.totalorder %s1738_s22, %s1738_s22 }
 0x15d   :  { %p1542_p2 = scmp.ne.s32.totalorder %s1738_s22, %s1541_s17  ;;  %p1547_p4 = scmp.lt.s32.totalorder %s1541_s17, %s1541_s17 }
 0x15f   :  { %p1548_p5 = por %p1547_p4, %p1546_p3 }
 0x161   :  { %p1549_p6 = pnand %p1548_p5, %p1542_p2 }
 0x163   :  { %1552 = shalt.err (!%p1549_p6)
}
 0x164   :  { %s1553_s19 = scalar_lea.hbm %s1790_s4, 4096 }
 0x165   :  { %p1554_p7 = scmp.ne.s32.totalorder %s1790_s4, %s1553_s19  ;;  %p1557_p8 = scmp.lt.u32.totalorder %s1553_s19, %s1790_s4 }
 0x167   :  { %p1559_p9 = pnand %p1557_p8, %p1554_p7 }
 0x169   :  { %1562 = shalt.err (!%p1559_p9)
}
 0x16a   :  { %s1573_s3 = smov 128   ;;  %s1574_s20 = smov 8  }
 0x16b   :  { %999 = dma.vmem_to_hbm [thread:$0]  %s1738_s22, 4096, %s1790_s4, [#allocation5], %s1573_s3, %s1573_s3, %s1574_s20  }
 0x16c   :  { %1563 = dma.done.wait [#allocation3], 2048  }
 0x16d   :  { %1564 = vsyncadd [#allocation3], 4294965248 }
 0x16e   :  { %1565 = dma.done.wait [#allocation5], 6144  }
 0x16f   :  { %1566 = vsyncadd [#allocation5], 4294961152 }
 0x170   :  { %1009 = vsyncpa [#allocation3], 1 }
 0x171   :  { %1010 = vsyncpa [#allocation5], 1 }

</bundles_post_ra>
